<compile_context>
chip_gen: v6e
topology: v6e:2x2x1
jax: 0.10.0
libtpu: 0.0.40
codegen_flags: <defaults>
</compile_context>

<pallas_src>
import jax
import jax.numpy as jnp
from jax.experimental import pallas as pl
from jax.experimental.pallas import tpu as pltpu

LANE = 128
SUBLANE = 8


def _round_up(x, m):
    return ((x + m - 1) // m) * m


def bernoulli_logits_kernel(x_ref, wt_ref, b_ref, logits_ref):
    # Hot path: (TILE_B, K) @ (K, N_pad) on the MXU + bias add, all in VMEM.
    logits = jnp.dot(
        x_ref[...], wt_ref[...], preferred_element_type=jnp.float32
    ) + b_ref[...]
    logits_ref[...] = logits.astype(logits_ref.dtype)


def make_bernoulli_params(weight, bias):
    """One-time parameter prep (done at 'module init', not per forward call).

    weight: (num_outputs, num_inputs) as in nn.Linear
    bias:   (num_outputs,)
    Returns (wt_padded, bias_padded, num_outputs) with the weight transposed
    to (num_inputs, N_pad) and the output axis zero-padded to a multiple of 128.
    """
    num_outputs, num_inputs = weight.shape
    n_pad = _round_up(num_outputs, LANE)
    wt = jnp.zeros((num_inputs, n_pad), dtype=jnp.float32)
    wt = wt.at[:, :num_outputs].set(weight.T.astype(jnp.float32))
    b2 = jnp.zeros((1, n_pad), dtype=jnp.float32)
    b2 = b2.at[0, :num_outputs].set(bias.astype(jnp.float32))
    return wt, b2, num_outputs


def bernoulli_head_logits(x, wt_padded, b_padded, num_outputs, tile_b=512):
    """x: (B, num_inputs) f32.  Returns logits (B, num_outputs) f32."""
    B, K = x.shape
    K_w, n_pad = wt_padded.shape
    assert K_w == K and n_pad % LANE == 0

    # Choose a batch tile: multiple of 8 sublanes, at most `tile_b` rows.
    tb = min(tile_b, _round_up(B, SUBLANE))
    tb = _round_up(tb, SUBLANE)
    b_pad = _round_up(B, tb)
    if b_pad != B:
        x = jnp.pad(x, ((0, b_pad - B), (0, 0)))

    grid = (b_pad // tb,)
    logits_padded = pl.pallas_call(
        bernoulli_logits_kernel,
        out_shape=jax.ShapeDtypeStruct((b_pad, n_pad), jnp.float32),
        grid_spec=pltpu.PrefetchScalarGridSpec(
            num_scalar_prefetch=0,
            grid=grid,
            in_specs=[
                pl.BlockSpec((tb, K), lambda i: (i, 0)),        # x tile
                pl.BlockSpec((K, n_pad), lambda i: (0, 0)),     # W (resident)
                pl.BlockSpec((1, n_pad), lambda i: (0, 0)),     # bias (resident)
            ],
            out_specs=pl.BlockSpec((tb, n_pad), lambda i: (i, 0)),
        ),
        compiler_params=pltpu.CompilerParams(
            dimension_semantics=("parallel",),  # shard batch tiles across TCs (v7x)
        ),
    )(x, wt_padded, b_padded)

    return logits_padded[:B, :num_outputs]


class FixedBernoulliJax:
    """Minimal stand-in for torch.distributions.Bernoulli(logits=...).

    probs is computed lazily (sigmoid), matching the torch object's on-demand
    materialization.
    """

    def __init__(self, logits):
        self.logits = logits

    @property
    def probs(self):
        return jax.nn.sigmoid(self.logits)

    # TODO(synk): sample()/log_prob()/entropy() of torch.distributions.Bernoulli
    # are Python-side distribution methods; only the defining tensors are
    # produced by the Pallas kernel.


def orthogonal_init(key, rows, cols, gain=1.0):
    """Deterministic equivalent of nn.init.orthogonal_ for a (rows, cols) weight."""
    n, m = (rows, cols) if rows >= cols else (cols, rows)
    a = jax.random.normal(key, (n, m), dtype=jnp.float32)
    q, r = jnp.linalg.qr(a)
    q = q * jnp.sign(jnp.diag(r))  # sign correction, matches torch
    if rows < cols:
        q = q.T
    return gain * q


if __name__ == "__main__":
    num_inputs, num_outputs, batch = 32, 16, 8

    key = jax.random.PRNGKey(0)
    k_x, k_w = jax.random.split(key)

    # Parameters: orthogonal weight (gain=1), zero bias — as in init_easy(gain=1, bias=0).
    weight = orthogonal_init(k_w, num_outputs, num_inputs, gain=1.0)  # (out, in)
    bias = jnp.zeros((num_outputs,), dtype=jnp.float32)

    # One-time prep: pre-transpose + lane-pad the parameters (not per forward).
    wt_padded, b_padded, n_out = make_bernoulli_params(weight, bias)

    x = jax.random.normal(k_x, (batch, num_inputs), dtype=jnp.float32)

    logits = bernoulli_head_logits(x, wt_padded, b_padded, n_out)
    dist = FixedBernoulliJax(logits)
    probs = dist.probs
    jax.block_until_ready((logits, probs))

    # Reference check (plain JAX) for the forward semantics.
    ref_logits = x @ weight.T + bias
    ref_probs = jax.nn.sigmoid(ref_logits)
    assert logits.shape == (batch, num_outputs)
    assert jnp.allclose(logits, ref_logits, atol=1e-5, rtol=1e-5)
    assert jnp.allclose(probs, ref_probs, atol=1e-5, rtol=1e-5)

    print("KERNEL_OK")
</pallas_src>

<mosaic_0001>
module attributes {stable_mosaic.version = 11 : i64} {
  func.func @bernoulli_logits_kernel(%arg0: i32, %arg1: memref<8x32xf32, #tpu.memory_space<vmem>>, %arg2: memref<32x128xf32, #tpu.memory_space<vmem>>, %arg3: memref<1x128xf32, #tpu.memory_space<vmem>>, %arg4: memref<8x128xf32, #tpu.memory_space<vmem>>) attributes {dimension_semantics = [#tpu.dimension_semantics<parallel>], iteration_bounds = array<i64: 1>, scalar_prefetch = 0 : i64, scratch_operands = 0 : i64, tpu.core_type = #tpu.core_type<tc>, window_params = [{transform_indices = @transform_0, window_bounds = array<i64: 8, 32>}, {pipeline_mode = #tpu.pipeline_mode<synchronous>, transform_indices = @transform_1, window_bounds = array<i64: 32, 128>}, {pipeline_mode = #tpu.pipeline_mode<synchronous>, transform_indices = @transform_2, window_bounds = array<i64: 1, 128>}, {transform_indices = @transform_3, window_bounds = array<i64: 8, 128>}]} {
    %c0 = arith.constant 0 : index
    %c0_0 = arith.constant 0 : index
    %0 = vector.load %arg1[%c0, %c0_0] : memref<8x32xf32, #tpu.memory_space<vmem>>, vector<8x32xf32>
    %c0_1 = arith.constant 0 : index
    %c0_2 = arith.constant 0 : index
    %1 = vector.load %arg2[%c0_1, %c0_2] : memref<32x128xf32, #tpu.memory_space<vmem>>, vector<32x128xf32>
    %cst = arith.constant dense<0.000000e+00> : vector<8x128xf32>
    %2 = tpu.matmul %0, %1, %cst {dimension_numbers = #tpu.dot_dimension_numbers<[1], [0], [0], [1], [0, 0, 1, 1], [], []>} : vector<8x32xf32>, vector<32x128xf32>, vector<8x128xf32> -> vector<8x128xf32>
    %c0_3 = arith.constant 0 : index
    %c0_4 = arith.constant 0 : index
    %3 = vector.load %arg3[%c0_3, %c0_4] : memref<1x128xf32, #tpu.memory_space<vmem>>, vector<1x128xf32>
    %4 = vector.broadcast %3 : vector<1x128xf32> to vector<8x128xf32>
    %5 = arith.addf %2, %4 : vector<8x128xf32>
    %c0_5 = arith.constant 0 : index
    %c0_6 = arith.constant 0 : index
    %6 = vector.load %arg4[%c0_5, %c0_6] : memref<8x128xf32, #tpu.memory_space<vmem>>, vector<8x128xf32>
    tpu.vector_store %arg4[%c0_5, %c0_6], %5 {strides = array<i32>} : memref<8x128xf32, #tpu.memory_space<vmem>>, vector<8x128xf32>,
    return
  }
  func.func @transform_0(%arg0: i32) -> (i32, i32) {
    %c0_i32 = arith.constant 0 : i32
    %c0_i32_0 = arith.constant 0 : i32
    return %arg0, %c0_i32 : i32, i32
  }
  func.func @transform_1(%arg0: i32) -> (i32, i32) {
    %c0_i32 = arith.constant 0 : i32
    %c0_i32_0 = arith.constant 0 : i32
    %c0_i32_1 = arith.constant 0 : i32
    return %c0_i32, %c0_i32_0 : i32, i32
  }
  func.func @transform_2(%arg0: i32) -> (i32, i32) {
    %c0_i32 = arith.constant 0 : i32
    %c0_i32_0 = arith.constant 0 : i32
    %c0_i32_1 = arith.constant 0 : i32
    return %c0_i32, %c0_i32_0 : i32, i32
  }
  func.func @transform_3(%arg0: i32) -> (i32, i32) {
    %c0_i32 = arith.constant 0 : i32
    %c0_i32_0 = arith.constant 0 : i32
    return %arg0, %c0_i32 : i32, i32
  }
}

</mosaic_0001>

<bundles_post_ra>
// kernel: tpu_custom_call.1
= control target key start
LH: loop header
LB: loop body
LE: loop exit
PB: predicated region body
PF: predicated region fallthrough
CT: control target
= control target key end

     0   :  { %8 = vsyncpa [#allocation3], 0  ;;  %s274_s0 = inlined_call_operand.hbm [shape: f32[8,32], index: 0, kind: input, shape index: {}]   ;;  %s275_s1 = inlined_call_operand.hbm [shape: f32[32,128], index: 1, kind: input, shape index: {}]   ;;  %s276_s2 = inlined_call_operand.vmem [shape: f32[1,128], index: 2, kind: input, shape index: {}]   ;;  %s277_s3 = inlined_call_operand.hbm [shape: f32[8,128], index: 3, kind: output, shape index: {}]  }
   0x1   :  { %9 = vsyncpa [#allocation6], 0 }
   0x2   :  { %10 = vsyncpa [#allocation4], 0  ;;  %s235_s12 = smov [#allocation2]   ;;  %s236_s14 = smov [#allocation5]  }
   0x3   :  { %s17_s13 = sshll.u32 %s235_s12, 4  ;;  %s26_s15 = sshll.u32 %s236_s14, 4  ;;  %s18_s13 = int_to_ptr.vmem [resolvable:$true] %s17_s13  ;;  %s27_s15 = int_to_ptr.vmem [resolvable:$true] %s26_s15 }
   0x4   :  { %s177_s16 = scalar_lea.vmem %s18_s13, 128  ;;  %p182_p1 = scmp.lt.s32.totalorder %s18_s13, %s18_s13 }
   0x5   :  { %p178_p0 = scmp.ne.s32.totalorder %s18_s13, %s177_s16  ;;  %p183_p2 = scmp.lt.s32.totalorder %s177_s16, %s177_s16 }
   0x7   :  { %p184_p3 = por %p183_p2, %p182_p1 }
   0x9   :  { %p185_p4 = pnand %p184_p3, %p178_p0 }
   0xb   :  { %188 = shalt.err (!%p185_p4)
}
   0xc   :  { %20 = dma.hbm_to_vmem [thread:$0]  %s274_s0, 128, %s18_s13, [#allocation3]  }
   0xd   :  { %s197_s19 = scalar_lea.vmem %s27_s15, 512  ;;  %p202_p6 = scmp.lt.s32.totalorder %s27_s15, %s27_s15 }
   0xe   :  { %p198_p5 = scmp.ne.s32.totalorder %s27_s15, %s197_s19  ;;  %p203_p7 = scmp.lt.s32.totalorder %s197_s19, %s197_s19 }
  0x10   :  { %p204_p8 = por %p203_p7, %p202_p6 }
  0x12   :  { %p205_p9 = pnand %p204_p8, %p198_p5 }
  0x14   :  { %208 = shalt.err (!%p205_p9)
}
  0x15   :  { %s237_s20 = smov 128   ;;  %s238_s21 = smov 8  }
  0x16   :  { %32 = dma.hbm_to_vmem [thread:$0]  %s275_s1, 512, %s27_s15, [#allocation6], %s237_s20, %s237_s20, %s238_s21  }
  0x17   :  { %229 = dma.done.wait [#allocation3], 128  }
  0x18   :  { %230 = vsyncadd [#allocation3], 4294967168 }
  0x19   :  { %231 = dma.done.wait [#allocation6], 512  }
  0x1a   :  { %232 = vsyncadd [#allocation6], 4294966784  ;;  %v239_v0 = vmov 0.0   ;;  %vm240_vm0 = vmmov 0   ;;  %v45_v1 = vld [vmem:[#allocation5 + $0x18] sm:$0xff]  ;;  %v44_v2 = vld [vmem:[#allocation5 + $0x10] sm:$0xff] }
  0x1b   :  { %151 = vmatprep.subr.mxu0 %v239_v0  ;;  %159 = vmatprep.mubr.msk.f32.mxu0 %vm240_vm0, %v239_v0  ;;  %v43_v3 = vld [vmem:[#allocation5 + $0x8] sm:$0xff]  ;;  %v42_v4 = vld [vmem:[#allocation5] sm:$0xff]  ;;  %v41_v5 = vld [vmem:[#allocation2] sm:$0xff]  ;;  %vm53_vm1 = vcmask 261120   ;;  %s241_s24 = smov [#allocation7]  }
  0x1c   :  { %152 = vmatpush3.msra.mxu0 %v45_v1  ;;  %v144_v6 = vld [vmem:[%s276_s2] ss:$0 sm:$0xff]  ;;  %s134_s25 = sshll.u32 %s241_s24, 4  ;;  %s135_s25 = int_to_ptr.vmem [resolvable:$true] %s134_s25 }
  0x1d   :  { %153 = vmatprep.subr.mxu0 %v239_v0  ;;  %s209_s26 = scalar_lea.vmem %s135_s25, 128  ;;  %p214_p11 = scmp.lt.s32.totalorder %s135_s25, %s135_s25 }
  0x1e   :  { %154 = vmatpush3.msra.mxu0 %v44_v2  ;;  %p210_p10 = scmp.ne.s32.totalorder %s135_s25, %s209_s26  ;;  %p215_p12 = scmp.lt.s32.totalorder %s209_s26, %s209_s26 }
  0x1f   :  { %155 = vmatprep.subr.mxu0 %v239_v0 }
  0x20   :  { %156 = vmatpush3.msra.mxu0 %v43_v3  ;;  %p216_p13 = por %p215_p12, %p214_p11 }
  0x21   :  { %157 = vmatprep.subr.mxu0 %v239_v0 }
  0x22   :  { %158 = vmatpush3.msra.mxu0 %v42_v4  ;;  %p217_p0 = pnand %p216_p13, %p210_p10 }
  0x23   :  { %160 = vmatmul.mubr.msk.f32.vlgmr.msra.gmra.mxu0 %vm53_vm1, %v41_v5 }
  0xe3   :  { %v123_v7 = vpop.f32.mrf.mxu0 }
  0xe4   :  { %v124_v8 = vadd.f32 %v144_v6, %v123_v7 }
  0xe5   :  { %v161_v9 = vpop.f32.mrf.mxu0 }
  0xe6   :  { %127 = vst [vmem:[#allocation7] sm:$0xff] %v124_v8 }
  0xe7   :  { %220 = shalt.err (!%p217_p0)
}
  0xe8   :  { %137 = dma.vmem_to_hbm [thread:$0]  %s135_s25, 128, %s277_s3, [#allocation4]  }
  0xe9   :  { %233 = dma.done.wait [#allocation4], 128  }
  0xea   :  { %234 = vsyncadd [#allocation4], 4294967168 }
  0xeb   :  { %141 = vsyncpa [#allocation3], 1 }
  0xec   :  { %142 = vsyncpa [#allocation6], 1 }
  0xed   :  { %143 = vsyncpa [#allocation4], 1 }

</bundles_post_ra>
